<compile_context>
chip_gen: v7x
topology: tpu7x:2x2x1
jax: 0.10.0
libtpu: 0.0.40
codegen_flags: <defaults>
</compile_context>

<pallas_src>
import jax
import jax.numpy as jnp
from jax.experimental import pallas as pl
from jax.experimental.pallas import tpu as pltpu


def _scaled_linear_kernel(x_ref, wt_ref, s_ref, b_ref, o_ref):
    # (tm, K) @ (K, tn) on the MXU, f32 accumulation.
    acc = jnp.dot(x_ref[...], wt_ref[...], preferred_element_type=jnp.float32)
    # Per-output-column renorm scale + bias epilogue: f32 VPU work on the small
    # (tm, tn) tile (~K/tm cheaper than rescaling the weight tile itself).
    o_ref[...] = (acc * s_ref[...] + b_ref[...]).astype(o_ref.dtype)


def _round_up(a, b):
    return (a + b - 1) // b * b


def linear_with_constraint(x, weight, bias=None, max_norm=None, *,
                           block_m=256, block_n=256,
                           matmul_dtype=jnp.bfloat16):
    """Pallas implementation of LinearWithConstraint.forward.

    x:      (..., in_features)
    weight: (out_features, in_features)
    bias:   (out_features,) or None
    """
    *lead, K = x.shape
    xf = x.reshape(-1, K)
    M = xf.shape[0]
    N, Kw = weight.shape
    assert Kw == K, "in_features mismatch between x and weight"

    w = weight.astype(jnp.float32)

    # ---- renorm scale, computed once per call (not per output tile) --------
    # torch.renorm(p=2, dim=0, maxnorm): rows with norm > maxnorm are scaled by
    # maxnorm / (norm + 1e-7).  Scaling W's row n == scaling output column n.
    if max_norm is not None:
        norm = jnp.sqrt(jnp.sum(w * w, axis=1))                       # (N,)
        scale = jnp.where(norm > max_norm, max_norm / (norm + 1e-7), 1.0)
    else:
        scale = jnp.ones((N,), jnp.float32)
    scale = scale.reshape(1, N)

    if bias is None:
        b = jnp.zeros((1, N), jnp.float32)
    else:
        b = bias.astype(jnp.float32).reshape(1, N)

    # ---- operand layout / dtype for the MXU ---------------------------------
    wt = w.T.astype(matmul_dtype)                                     # (K, N)
    xf = xf.astype(matmul_dtype)
    op_bytes = jnp.dtype(matmul_dtype).itemsize

    # ---- VMEM-budgeted whole-K tiles ----------------------------------------
    def vmem_est(tm_, tn_):
        # double-buffered x and W^T operand tiles + double-buffered f32 output
        # tile + double-buffered scale & bias slices.
        return (2 * (tm_ * K + K * tn_) * op_bytes
                + 2 * tm_ * tn_ * 4
                + 2 * 2 * tn_ * 4 * 2)

    budget = 24 << 20   # conservative: fits every generation's scoped VMEM
    tm = M if M <= block_m else block_m
    tn = N if N <= block_n else block_n
    while vmem_est(tm, tn) > budget and tm > 8:
        tm = max(8, _round_up(tm // 2, 8))
    while vmem_est(tm, tn) > budget and tn > 128:
        tn = max(128, _round_up(tn // 2, 128))

    grid_m = pl.cdiv(M, tm)
    grid_n = pl.cdiv(N, tn)

    # ---- grid nesting: keep the operand with the larger re-read resident ----
    # (N outer, M inner): W read once, x re-read grid_n times.
    # (M outer, N inner): x read once, W re-read grid_m times.
    n_outer = M * (grid_n - 1) <= N * (grid_m - 1)
    if n_outer:
        grid = (grid_n, grid_m)
        x_map = lambda j, i: (i, 0)
        w_map = lambda j, i: (0, j)
        v_map = lambda j, i: (0, j)
        o_map = lambda j, i: (i, j)
    else:
        grid = (grid_m, grid_n)
        x_map = lambda i, j: (i, 0)
        w_map = lambda i, j: (0, j)
        v_map = lambda i, j: (0, j)
        o_map = lambda i, j: (i, j)

    vmem_limit = int(min(max(32 << 20, vmem_est(tm, tn) + (4 << 20)), 48 << 20))

    out = pl.pallas_call(
        _scaled_linear_kernel,
        out_shape=jax.ShapeDtypeStruct((M, N), jnp.float32),
        grid=grid,
        in_specs=[
            pl.BlockSpec((tm, K), x_map),      # activation rows (whole K)
            pl.BlockSpec((K, tn), w_map),      # W^T column tile (whole K)
            pl.BlockSpec((1, tn), v_map),      # per-column renorm scale
            pl.BlockSpec((1, tn), v_map),      # bias slice
        ],
        out_specs=pl.BlockSpec((tm, tn), o_map),
        compiler_params=pltpu.CompilerParams(
            dimension_semantics=("parallel", "parallel"),
            vmem_limit_bytes=vmem_limit),
    )(xf, wt, scale, b)

    return out.reshape(*lead, N).astype(x.dtype)


def linear_with_constraint_ref(x, weight, bias, max_norm):
    """Pure-JAX reference (mirrors the PyTorch forward)."""
    w = weight
    if max_norm is not None:
        norm = jnp.sqrt(jnp.sum(w * w, axis=1, keepdims=True))
        scale = jnp.where(norm > max_norm, max_norm / (norm + 1e-7), 1.0)
        w = w * scale
    y = jnp.einsum('...k,nk->...n', x, w)
    if bias is not None:
        y = y + bias
    return y


if __name__ == "__main__":
    key = jax.random.PRNGKey(0)
    kx, kw, kb, ks = jax.random.split(key, 4)

    # Small shapes consistent with the module: batch=2, seq=8, in=32, out=128.
    batch, seq, in_features, out_features = 2, 8, 32, 128
    max_norm = 0.5

    x = jax.random.normal(kx, (batch, seq, in_features), jnp.float32)
    # Per-row magnitudes straddle max_norm so both renorm branches are hit.
    row_scale = jax.random.uniform(ks, (out_features, 1), jnp.float32,
                                   0.02, 0.4)
    weight = jax.random.normal(kw, (out_features, in_features),
                               jnp.float32) * row_scale
    bias = 0.1 * jax.random.normal(kb, (out_features,), jnp.float32)

    ref = linear_with_constraint_ref(x, weight, bias, max_norm)

    # Exact-f32 path (matmul operands kept in f32): tight tolerance.
    out_f32 = linear_with_constraint(x, weight, bias, max_norm=max_norm,
                                     matmul_dtype=jnp.float32)
    out_f32 = jax.block_until_ready(out_f32)
    assert out_f32.shape == (batch, seq, out_features)
    assert jnp.allclose(out_f32, ref, atol=1e-4, rtol=1e-4), \
        "f32 path mismatch vs reference"

    # Default deployment path: bf16 MXU operands, f32 accumulation/epilogue.
    out_bf16 = linear_with_constraint(x, weight, bias, max_norm=max_norm)
    out_bf16 = jax.block_until_ready(out_bf16)
    assert out_bf16.shape == (batch, seq, out_features)
    assert jnp.allclose(out_bf16, ref, atol=5e-2, rtol=5e-2), \
        "bf16 path mismatch vs reference"

    print("KERNEL_OK")
</pallas_src>

<mosaic_0001>
module attributes {stable_mosaic.version = 11 : i64} {
  func.func @_scaled_linear_kernel(%arg0: i32, %arg1: i32, %arg2: memref<16x32xf32, #tpu.memory_space<vmem>>, %arg3: memref<32x128xf32, #tpu.memory_space<vmem>>, %arg4: memref<1x128xf32, #tpu.memory_space<vmem>>, %arg5: memref<1x128xf32, #tpu.memory_space<vmem>>, %arg6: memref<16x128xf32, #tpu.memory_space<vmem>>) attributes {dimension_semantics = [#tpu.dimension_semantics<parallel>, #tpu.dimension_semantics<parallel>], iteration_bounds = array<i64: 1, 1>, scalar_prefetch = 0 : i64, scratch_operands = 0 : i64, tpu.core_type = #tpu.core_type<tc>, window_params = [{transform_indices = @transform_0, window_bounds = array<i64: 16, 32>}, {transform_indices = @transform_1, window_bounds = array<i64: 32, 128>}, {transform_indices = @transform_2, window_bounds = array<i64: 1, 128>}, {transform_indices = @transform_3, window_bounds = array<i64: 1, 128>}, {transform_indices = @transform_4, window_bounds = array<i64: 16, 128>}]} {
    %c0 = arith.constant 0 : index
    %c0_0 = arith.constant 0 : index
    %0 = vector.load %arg2[%c0, %c0_0] : memref<16x32xf32, #tpu.memory_space<vmem>>, vector<16x32xf32>
    %c0_1 = arith.constant 0 : index
    %c0_2 = arith.constant 0 : index
    %1 = vector.load %arg3[%c0_1, %c0_2] : memref<32x128xf32, #tpu.memory_space<vmem>>, vector<32x128xf32>
    %cst = arith.constant dense<0.000000e+00> : vector<16x128xf32>
    %2 = tpu.matmul %0, %1, %cst {dimension_numbers = #tpu.dot_dimension_numbers<[1], [0], [0], [1], [0, 0, 1, 1], [], []>} : vector<16x32xf32>, vector<32x128xf32>, vector<16x128xf32> -> vector<16x128xf32>
    %c0_3 = arith.constant 0 : index
    %c0_4 = arith.constant 0 : index
    %3 = vector.load %arg4[%c0_3, %c0_4] : memref<1x128xf32, #tpu.memory_space<vmem>>, vector<1x128xf32>
    %4 = vector.broadcast %3 : vector<1x128xf32> to vector<16x128xf32>
    %5 = arith.mulf %2, %4 : vector<16x128xf32>
    %c0_5 = arith.constant 0 : index
    %c0_6 = arith.constant 0 : index
    %6 = vector.load %arg5[%c0_5, %c0_6] : memref<1x128xf32, #tpu.memory_space<vmem>>, vector<1x128xf32>
    %7 = vector.broadcast %6 : vector<1x128xf32> to vector<16x128xf32>
    %8 = arith.addf %5, %7 : vector<16x128xf32>
    %c0_7 = arith.constant 0 : index
    %c0_8 = arith.constant 0 : index
    %9 = vector.load %arg6[%c0_7, %c0_8] : memref<16x128xf32, #tpu.memory_space<vmem>>, vector<16x128xf32>
    tpu.vector_store %arg6[%c0_7, %c0_8], %8 {strides = array<i32>} : memref<16x128xf32, #tpu.memory_space<vmem>>, vector<16x128xf32>,
    return
  }
  func.func @transform_0(%arg0: i32, %arg1: i32) -> (i32, i32) {
    %c0_i32 = arith.constant 0 : i32
    %c0_i32_0 = arith.constant 0 : i32
    return %arg1, %c0_i32 : i32, i32
  }
  func.func @transform_1(%arg0: i32, %arg1: i32) -> (i32, i32) {
    %c0_i32 = arith.constant 0 : i32
    %c0_i32_0 = arith.constant 0 : i32
    return %c0_i32, %arg0 : i32, i32
  }
  func.func @transform_2(%arg0: i32, %arg1: i32) -> (i32, i32) {
    %c0_i32 = arith.constant 0 : i32
    %c0_i32_0 = arith.constant 0 : i32
    return %c0_i32, %arg0 : i32, i32
  }
  func.func @transform_3(%arg0: i32, %arg1: i32) -> (i32, i32) {
    %c0_i32 = arith.constant 0 : i32
    %c0_i32_0 = arith.constant 0 : i32
    return %c0_i32, %arg0 : i32, i32
  }
  func.func @transform_4(%arg0: i32, %arg1: i32) -> (i32, i32) {
    %c0_i32 = arith.constant 0 : i32
    return %arg1, %arg0 : i32, i32
  }
}

</mosaic_0001>

<bundles_post_ra>
// kernel: tpu_custom_call.1
= control target key start
LH: loop header
LB: loop body
LE: loop exit
PB: predicated region body
PF: predicated region fallthrough
CT: control target
= control target key end

     0   :  { %9 = vsyncpa [#allocation3], 0  ;;  %s359_s0 = inlined_call_operand.hbm [shape: f32[16,32], index: 0, kind: input, shape index: {}]   ;;  %s360_s1 = inlined_call_operand.hbm [shape: f32[32,128], index: 1, kind: input, shape index: {}]   ;;  %s361_s2 = inlined_call_operand.vmem [shape: f32[1,128], index: 2, kind: input, shape index: {}]   ;;  %s362_s3 = inlined_call_operand.vmem [shape: f32[1,128], index: 3, kind: input, shape index: {}]   ;;  %s363_s4 = inlined_call_operand.hbm [shape: f32[16,128], index: 4, kind: output, shape index: {}]  }
   0x1   :  { %10 = vsyncpa [#allocation6], 0 }
   0x2   :  { %11 = vsyncpa [#allocation4], 0  ;;  %s278_s15 = smov [#allocation2]   ;;  %s206_s19 = scalar_lea.hbm %s359_s0, 256 }
   0x3   :  { %s17_s16 = sshll.u32 %s278_s15, 4  ;;  %p207_p0 = scmp.ne.s32.totalorder %s359_s0, %s206_s19  ;;  %s18_s16 = int_to_ptr.vmem [resolvable:$true] %s17_s16 }
   0x4   :  { %p210_p1 = scmp.lt.u32.totalorder %s206_s19, %s359_s0 }
   0x6   :  { %p212_p2 = pnand %p210_p1, %p207_p0 }
   0x8   :  { %215 = shalt.err (!%p212_p2)
}
   0x9   :  { %s216_s24 = scalar_lea.vmem %s18_s16, 256  ;;  %p221_p4 = scmp.lt.s32.totalorder %s18_s16, %s18_s16 }
   0xa   :  { %p217_p3 = scmp.ne.s32.totalorder %s18_s16, %s216_s24  ;;  %p222_p5 = scmp.lt.s32.totalorder %s216_s24, %s216_s24 }
   0xc   :  { %p223_p6 = por %p222_p5, %p221_p4 }
   0xe   :  { %p224_p7 = pnand %p223_p6, %p217_p3 }
  0x10   :  { %227 = shalt.err (!%p224_p7)
}
  0x11   :  { %s279_s25 = smov 128   ;;  %s280_s26 = smov 8  }
  0x12   :  { %23 = dma.hbm_to_vmem [thread:$0]  %s359_s0, 256, %s18_s16, [#allocation3], %s279_s25, %s279_s25, %s280_s26  }
  0x13   :  { %s281_s29 = smov [#allocation5]   ;;  %s228_s7 = scalar_lea.hbm %s360_s1, 512 }
  0x14   :  { %s29_s30 = sshll.u32 %s281_s29, 4  ;;  %p229_p8 = scmp.ne.s32.totalorder %s360_s1, %s228_s7  ;;  %s30_s30 = int_to_ptr.vmem [resolvable:$true] %s29_s30 }
  0x15   :  { %p232_p9 = scmp.lt.u32.totalorder %s228_s7, %s360_s1 }
  0x17   :  { %p234_p10 = pnand %p232_p9, %p229_p8 }
  0x19   :  { %237 = shalt.err (!%p234_p10)
}
  0x1a   :  { %s238_s12 = scalar_lea.vmem %s30_s30, 512  ;;  %p243_p12 = scmp.lt.s32.totalorder %s30_s30, %s30_s30 }
  0x1b   :  { %p239_p11 = scmp.ne.s32.totalorder %s30_s30, %s238_s12  ;;  %p244_p13 = scmp.lt.s32.totalorder %s238_s12, %s238_s12 }
  0x1d   :  { %p245_p0 = por %p244_p13, %p243_p12 }
  0x1f   :  { %p246_p1 = pnand %p245_p0, %p239_p11 }
  0x21   :  { %249 = shalt.err (!%p246_p1)
}
  0x22   :  { %35 = dma.hbm_to_vmem [thread:$0]  %s360_s1, 512, %s30_s30, [#allocation6], %s279_s25, %s279_s25, %s280_s26  }
  0x23   :  { %272 = dma.done.wait [#allocation3], 256  }
  0x24   :  { %273 = vsyncadd [#allocation3], 4294967040 }
  0x25   :  { %274 = dma.done.wait [#allocation6], 512  }
  0x26   :  { %275 = vsyncadd [#allocation6], 4294966784  ;;  %vm52_vm0 = vcmask 261120   ;;  %v48_v0 = vld [vmem:[#allocation5] sm:$0xff]  ;;  %v49_v1 = vld [vmem:[#allocation5 + $0x8] sm:$0xff]  ;;  %s282_s17 = smov [#allocation7]  }
  0x27   :  { %v50_v2 = vld [vmem:[#allocation5 + $0x10] sm:$0xff]  ;;  %v193_v3 = vpack.c.bf16 %v49_v1, %v48_v0  ;;  %v51_v4 = vld [vmem:[#allocation5 + $0x18] sm:$0xff]  ;;  %s159_s18 = sshll.u32 %s282_s17, 4  ;;  %s160_s18 = int_to_ptr.vmem [resolvable:$true] %s159_s18 }
  0x28   :  { %v46_v5 = vld [vmem:[#allocation2] sm:$0xff]  ;;  %v197_v6 = vpack.c.bf16 %v51_v4, %v50_v2  ;;  %v47_v7 = vld [vmem:[#allocation2 + $0x8] sm:$0xff]  ;;  %s250_s19 = scalar_lea.vmem %s160_s18, 256  ;;  %p255_p3 = scmp.lt.s32.totalorder %s160_s18, %s160_s18 }
  0x29   :  { %190 = vmatprep.mubr.msk.f32.mxu0 %vm52_vm0, %v46_v5  ;;  %194 = vmatprep.subr.bf16.mxu0 %v193_v3  ;;  %v174_v8 = vld [vmem:[%s361_s2] ss:$0 sm:$0xff]  ;;  %p251_p2 = scmp.ne.s32.totalorder %s160_s18, %s250_s19  ;;  %p256_p4 = scmp.lt.s32.totalorder %s250_s19, %s250_s19 }
  0x2a   :  { %196 = vmatpush3.bf16.msra.mxu0 %v193_v3  ;;  %v175_v10 = vld [vmem:[%s362_s3] ss:$0 sm:$0xff] }
  0x2b   :  { %198 = vmatprep.subr.bf16.mxu0 %v197_v6  ;;  %p257_p5 = por %p256_p4, %p255_p3 }
  0x2d   :  { %p258_p6 = pnand %p257_p5, %p251_p2 }
  0x2e   :  { %200 = vmatpush3.bf16.msra.mxu0 %v197_v6 }
  0x31   :  { %191 = vmatmul.mubr.msk.f32.vlgmr.msra.gmra.mrb[0].mxu0 %vm52_vm0, %v47_v7 }
 0x104   :  { %v192_v9 = vpop.f32.mrb[0].mxu0 }
 0x105   :  { %v142_v11 = vmul.f32 %v192_v9, %v174_v8  ;;  %v125_v12 = vpop.f32.mrb[1].mxu0 }
 0x106   :  { %v141_v13 = vmul.f32 %v174_v8, %v125_v12 }
 0x107   :  { %v151_v14 = vadd.f32 %v175_v10, %v142_v11 }
 0x108   :  { %v150_v15 = vadd.f32 %v175_v10, %v141_v13 }
 0x109   :  { %153 = vst [vmem:[#allocation7 + $0x8] sm:$0xff] %v151_v14 }
 0x10a   :  { %152 = vst [vmem:[#allocation7] sm:$0xff] %v150_v15 }
 0x10b   :  { %261 = shalt.err (!%p258_p6)
}
 0x10c   :  { %s262_s3 = scalar_lea.hbm %s363_s4, 256 }
 0x10d   :  { %p263_p7 = scmp.ne.s32.totalorder %s363_s4, %s262_s3  ;;  %p266_p8 = scmp.lt.u32.totalorder %s262_s3, %s363_s4 }
 0x10f   :  { %p268_p9 = pnand %p266_p8, %p263_p7 }
 0x111   :  { %271 = shalt.err (!%p268_p9)
}
 0x112   :  { %165 = dma.vmem_to_hbm [thread:$0]  %s160_s18, 256, %s363_s4, [#allocation4], %s279_s25, %s279_s25, %s280_s26  }
 0x113   :  { %276 = dma.done.wait [#allocation4], 256  }
 0x114   :  { %277 = vsyncadd [#allocation4], 4294967040 }
 0x115   :  { %169 = vsyncpa [#allocation3], 1 }
 0x116   :  { %170 = vsyncpa [#allocation6], 1 }
 0x117   :  { %171 = vsyncpa [#allocation4], 1 }

</bundles_post_ra>
